<compile_context>
chip_gen: v7x
topology: tpu7x:2x2x1
jax: 0.10.0
libtpu: 0.0.40
codegen_flags: <defaults>
</compile_context>

<pallas_src>
import functools

import jax
import jax.numpy as jnp
from jax.experimental import pallas as pl
from jax.experimental.pallas import tpu as pltpu

LANES = 128
SUBLANES = 8
# ~2 MiB per block: large enough to make the fixed per-grid-step cost
# negligible even at v7x's 3.2 TB/s HBM, small enough that buffers plus the
# kernel's f32 intermediates stay far below the scoped-VMEM limit everywhere.
TARGET_BLOCK_BYTES = 2 << 20
# Keep at least this many grid steps for mid-size tensors (>= 4 per TC on v7x).
MIN_GRID_STEPS = 8
VMEM_LIMIT_BYTES = 32 << 20


def _ema_kernel(p_ref, s_ref, o_ref, *, decay):
    # Widen to f32 in VMEM (cheap VPU cast; keeps HBM traffic in storage dtype).
    p = p_ref[...].astype(jnp.float32)
    s = s_ref[...].astype(jnp.float32)
    o_ref[...] = ((1.0 - decay) * p + decay * s).astype(o_ref.dtype)


def _round_up(x, m):
    return -(-x // m) * m


def _choose_tile(rows, itemsize):
    """Row tile for a (rows, 128) slab of the given itemsize.

    Largest multiple of 8 sublanes whose block is <= TARGET_BLOCK_BYTES, but
    shrunk so mid-size tensors still get >= MIN_GRID_STEPS grid steps
    (TensorCore balance on v7x + DMA/compute overlap).
    """
    cap = max(SUBLANES,
              (TARGET_BLOCK_BYTES // (LANES * itemsize)) // SUBLANES * SUBLANES)
    if rows <= SUBLANES:
        return rows                       # tiny tensor: one full-extent block
    per_step = _round_up(-(-rows // MIN_GRID_STEPS), SUBLANES)
    return max(SUBLANES, min(cap, per_step))


def _ema_2d(p2d, s2d, decay, tile):
    rows, cols = p2d.shape
    assert cols == LANES
    kernel = functools.partial(_ema_kernel, decay=float(decay))
    return pl.pallas_call(
        kernel,
        out_shape=jax.ShapeDtypeStruct((rows, cols), p2d.dtype),
        grid_spec=pltpu.PrefetchScalarGridSpec(
            num_scalar_prefetch=0,
            grid=(pl.cdiv(rows, tile),),   # partial last block is masked
            in_specs=[
                pl.BlockSpec((tile, LANES), lambda i: (i, 0)),
                pl.BlockSpec((tile, LANES), lambda i: (i, 0)),
            ],
            out_specs=pl.BlockSpec((tile, LANES), lambda i: (i, 0)),
        ),
        # The new shadow IS the output: reuse the shadow slab's HBM buffer.
        input_output_aliases={1: 0},
        compiler_params=pltpu.CompilerParams(
            dimension_semantics=("parallel",),   # v7x: shard grid over 2 TCs
            vmem_limit_bytes=VMEM_LIMIT_BYTES,
        ),
    )(p2d, s2d)


# `shadow` (argnum 1) is donated so the aliasing above is copy-free: the caller
# (the EMA class) replaces its shadow with the result and never reuses the old
# array.  `decay` is static (Python float).
@functools.partial(jax.jit, static_argnums=(2,), donate_argnums=(1,))
def ema_update(parameter, shadow, decay):
    """Elementwise EMA of an arbitrarily-shaped tensor via a Pallas kernel."""
    orig_shape = parameter.shape
    orig_dtype = parameter.dtype
    n = parameter.size

    p_flat = jnp.ravel(parameter)
    s_flat = jnp.ravel(shadow)
    if s_flat.dtype != orig_dtype:
        s_flat = s_flat.astype(orig_dtype)

    # Fast path: lane-aligned size -> reshape is a free bitcast, no pad/slice.
    pad = (-n) % LANES
    if pad:
        # Rare path: pads cost one extra HBM copy of p and s (kept minimal:
        # only up to 127 trailing elements of padding are added).
        p_flat = jnp.pad(p_flat, (0, pad))
        s_flat = jnp.pad(s_flat, (0, pad))
    rows = (n + pad) // LANES

    tile = _choose_tile(rows, jnp.dtype(orig_dtype).itemsize)
    avg2d = _ema_2d(p_flat.reshape(rows, LANES),
                    s_flat.reshape(rows, LANES), decay, tile)

    if pad:
        return avg2d.reshape(-1)[:n].reshape(orig_shape)
    return avg2d.reshape(orig_shape)


class EMA:
    """JAX/Pallas port of the PyTorch EMA module (same forward semantics).

    Note: the shadow keeps the parameter's dtype (matching the PyTorch module).
    For bf16 parameters with decay >= ~0.99, consider registering an f32 copy
    as the shadow to avoid the EMA update rounding to zero in bf16.
    """

    # TODO(synk): for models with hundreds of tiny parameters, pack all
    # registered tensors into one persistent (rows, 128) slab + offset table
    # and run a single pallas_call per EMA step to amortize dispatch/launch.

    def __init__(self, decay):
        self.decay = decay
        self.shadow = {}

    def register(self, name, parameter):
        self.shadow[name] = jnp.array(parameter)  # private copy (clone)

    def __call__(self, name, parameter):
        assert name in self.shadow
        # The old shadow buffer is donated inside ema_update (its HBM buffer
        # becomes the new shadow); it is replaced below and never read again.
        avg = ema_update(parameter, self.shadow[name], self.decay)
        self.shadow[name] = avg
        return avg


if __name__ == "__main__":
    key = jax.random.PRNGKey(0)
    k0, k1, k2, k3 = jax.random.split(key, 4)
    decay = 0.9

    ema = EMA(decay)

    # 1) conv-weight-like NCHW f32 parameter (primary example, fast path).
    p0 = jax.random.normal(k0, (2, 4, 16, 16), dtype=jnp.float32)
    p1 = p0 + 0.1 * jax.random.normal(k1, (2, 4, 16, 16), dtype=jnp.float32)
    ema.register("conv.weight", p0)
    avg = jax.block_until_ready(ema("conv.weight", p1))
    ref = (1.0 - decay) * p1 + decay * p0
    assert avg.shape == p1.shape and avg.dtype == p1.dtype
    assert jnp.allclose(avg, ref, atol=1e-6), "f32 EMA mismatch vs reference"
    assert jnp.allclose(ema.shadow["conv.weight"], ref, atol=1e-6)

    # 2) larger f32 tensor: multi-step grid + masked partial last block,
    #    no padding (384000 % 128 == 0).
    q0 = jax.random.normal(k2, (96, 4000), dtype=jnp.float32)
    q1 = q0 + 0.05 * jax.random.normal(k3, (96, 4000), dtype=jnp.float32)
    ema.register("big.weight", q0)
    avg2 = jax.block_until_ready(ema("big.weight", q1))
    ref2 = (1.0 - decay) * q1 + decay * q0
    assert jnp.allclose(avg2, ref2, atol=1e-6), "big f32 EMA mismatch"

    # 3) bf16 parameter: slab stays bf16 end-to-end, kernel widens to f32.
    b0 = p0.astype(jnp.bfloat16)
    b1 = p1.astype(jnp.bfloat16)
    ema.register("bf16.weight", b0)
    avg3 = jax.block_until_ready(ema("bf16.weight", b1))
    ref3 = ((1.0 - decay) * b1.astype(jnp.float32)
            + decay * b0.astype(jnp.float32)).astype(jnp.bfloat16)
    assert avg3.dtype == jnp.bfloat16
    assert jnp.allclose(avg3.astype(jnp.float32), ref3.astype(jnp.float32),
                        atol=2e-2), "bf16 EMA mismatch"

    # 4) non-lane-aligned shape: exercises the pad path + final slice.
    r0 = jax.random.normal(k2, (7, 33), dtype=jnp.float32)
    r1 = r0 + 0.2 * jax.random.normal(k3, (7, 33), dtype=jnp.float32)
    ema.register("odd.bias", r0)
    avg4 = jax.block_until_ready(ema("odd.bias", r1))
    ref4 = (1.0 - decay) * r1 + decay * r0
    assert avg4.shape == r1.shape
    assert jnp.allclose(avg4, ref4, atol=1e-6), "odd-shape EMA mismatch"

    print("KERNEL_OK")
</pallas_src>

<mosaic_0001>
module attributes {stable_mosaic.version = 11 : i64} {
  func.func @_ema_kernel(%arg0: i32, %arg1: memref<8x128xf32, #tpu.memory_space<vmem>>, %arg2: memref<8x128xf32, #tpu.memory_space<vmem>>, %arg3: memref<8x128xf32, #tpu.memory_space<vmem>>) attributes {dimension_semantics = [#tpu.dimension_semantics<parallel>], iteration_bounds = array<i64: 2>, scalar_prefetch = 0 : i64, scratch_operands = 0 : i64, tpu.core_type = #tpu.core_type<tc>, window_params = [{transform_indices = @transform_0, window_bounds = array<i64: 8, 128>}, {transform_indices = @transform_1, window_bounds = array<i64: 8, 128>}, {transform_indices = @transform_2, window_bounds = array<i64: 8, 128>}]} {
    %c0 = arith.constant 0 : index
    %c0_0 = arith.constant 0 : index
    %0 = vector.load %arg1[%c0, %c0_0] : memref<8x128xf32, #tpu.memory_space<vmem>>, vector<8x128xf32>
    %c0_1 = arith.constant 0 : index
    %c0_2 = arith.constant 0 : index
    %1 = vector.load %arg2[%c0_1, %c0_2] : memref<8x128xf32, #tpu.memory_space<vmem>>, vector<8x128xf32>
    %cst = arith.constant 1.000000e-01 : f32
    %2 = vector.broadcast %cst : f32 to vector<8x128xf32>
    %3 = arith.mulf %2, %0 : vector<8x128xf32>
    %cst_3 = arith.constant 0.899999976 : f32
    %4 = vector.broadcast %cst_3 : f32 to vector<8x128xf32>
    %5 = arith.mulf %4, %1 : vector<8x128xf32>
    %6 = arith.addf %3, %5 : vector<8x128xf32>
    %c0_4 = arith.constant 0 : index
    %c0_5 = arith.constant 0 : index
    %7 = vector.load %arg3[%c0_4, %c0_5] : memref<8x128xf32, #tpu.memory_space<vmem>>, vector<8x128xf32>
    tpu.vector_store %arg3[%c0_4, %c0_5], %6 {strides = array<i32>} : memref<8x128xf32, #tpu.memory_space<vmem>>, vector<8x128xf32>,
    return
  }
  func.func @transform_0(%arg0: i32) -> (i32, i32) {
    %c0_i32 = arith.constant 0 : i32
    %c0_i32_0 = arith.constant 0 : i32
    return %arg0, %c0_i32 : i32, i32
  }
  func.func @transform_1(%arg0: i32) -> (i32, i32) {
    %c0_i32 = arith.constant 0 : i32
    %c0_i32_0 = arith.constant 0 : i32
    return %arg0, %c0_i32 : i32, i32
  }
  func.func @transform_2(%arg0: i32) -> (i32, i32) {
    %c0_i32 = arith.constant 0 : i32
    %c0_i32_0 = arith.constant 0 : i32
    return %arg0, %c0_i32 : i32, i32
  }
}

</mosaic_0001>

<bundles_post_ra>
// kernel: ema_update.1
= control target key start
LH: loop header
LB: loop body
LE: loop exit
PB: predicated region body
PF: predicated region fallthrough
CT: control target
= control target key end

     0   :  { %s249_s9 = smov 0   ;;  %s277_s0 = inlined_call_operand.vmem [shape: f32[16,128], index: 0, kind: input, shape index: {}]   ;;  %s278_s1 = inlined_call_operand.vmem [shape: f32[16,128], index: 1, kind: input, shape index: {}, may-alias: {1,2}]   ;;  %s279_s2 = inlined_call_operand.vmem [shape: f32[16,128], index: 2, kind: output, shape index: {}, may-alias: {1,2}]  }
   0x1 LB: > { %s227_s10 = sadd.s32 4294967295, %s251_s9   ;;  %p231_p0 = scmp.ge.s32.totalorder %s251_s9, 1  ;;  %s251_s9 = sphi %s249_s9, %s12_s9  }
   0x2   : > { %p120_p1 = scmp.lt.s32.totalorder %s251_s9, 3 }
   0x4   : > { %p121_p2 = pnand %p231_p0, %p120_p1 }
   0x5   : > { %p144_p3 = scmp.lt.s32.totalorder (!%p121_p2), %s227_s10, 1 }
   0x6   : > { %124 = sbr.rel (%p121_p2) target bundleno = 23 (0x17), region = 28 }
   0xd   : > { %s281_s10 = smov (!%p144_p3, %s227_s10), 1 }
   0xe   : > { %s232_s11 = sshll.u32 %s281_s10, 3 }
   0xf   : > { %s147_s14 = scalar_lea.vmem %s277_s0, %s232_s11  ;;  %s151_s17 = scalar_lea.vmem %s278_s1, %s232_s11 }
  0x10   : > { %v156_v0 = vld [vmem:[%s147_s14] sm:$0xff]  ;;  %s155_s20 = scalar_lea.vmem %s279_s2, %s232_s11 }
  0x11   : > { %v157_v1 = vld [vmem:[%s151_s17] sm:$0xff]  ;;  %v158_v2 = vmul.f32 0.1, %v156_v0 }
  0x12   : > { %v159_v3 = vmul.f32 0.9, %v157_v1 }
  0x14   : > { %v160_v4 = vadd.f32 %v159_v3, %v158_v2 }
  0x16   : > { %161 = vst [vmem:[%s155_s20] sm:$0xff] %v160_v4 }
  0x17 PF: > { %s12_s9 = sadd.s32 1, %s251_s9  }
  0x18   : > { %p9_p4 = scmp.ge.s32.totalorder %s12_s9, 4  }
  0x1a   :  { %11 = sbr.rel (!%p9_p4) target bundleno = 1 (0x1), region = 61 }

</bundles_post_ra>
